<compile_context>
chip_gen: v6e
topology: v6e:2x2x1
jax: 0.10.0
libtpu: 0.0.40
codegen_flags: <defaults>
</compile_context>

<pallas_src>
import jax
import jax.numpy as jnp
from jax.experimental import pallas as pl
from jax.experimental.pallas import tpu as pltpu

GAMMA = 2.0  # module default


def _round_up(x, m):
    return ((x + m - 1) // m) * m


# per-kernel VMEM working-set target (well under default scoped limits once
# vmem_limit_bytes is raised; leaves headroom even on v7x's 64 MiB/TC)
_VMEM_TILE_BUDGET = 28 * 1024 * 1024


def _per_row_vmem_bytes(n_cls, itemsize):
    """Estimated VMEM bytes per logits row, including lane padding."""
    c_pad = _round_up(n_cls, 128)
    return (2 * c_pad * itemsize   # logits block, double-buffered
            + 2 * 128 * 4          # (tile_n, 1) int32 targets pad to 128 lanes, x2 buffers
            + 4 * c_pad * 4)       # headroom for in-kernel f32 temporaries


def _pick_tile_n(n_rows, n_cls, itemsize):
    """Largest row tile fitting the VMEM budget (16-aligned for bf16, 8 for f32)."""
    align = 16 if itemsize < 4 else 8
    rows = _VMEM_TILE_BUDGET // _per_row_vmem_bytes(n_cls, itemsize)
    rows = max(align, (rows // align) * align)
    if rows >= n_rows:
        return n_rows              # single tile: block == full dim, always legal
    return int(rows)


def _make_focal_kernel(n_rows, tile_n, n_tiles, gamma):
    gamma = float(gamma)
    ragged = (n_rows % tile_n) != 0

    def kernel(x_ref, t_ref, o_ref):
        x = x_ref[...].astype(jnp.float32)        # (tile_n, C); all math in f32
        t = t_ref[...]                            # (tile_n, 1) int32 targets

        # numerically-stable log-softmax statistics along the class/lane axis
        m = jnp.max(x, axis=-1, keepdims=True)                        # (tile_n, 1)
        shifted = x - m                                               # (tile_n, C)
        lse = jnp.log(jnp.sum(jnp.exp(shifted), axis=-1, keepdims=True))

        # gather the shifted target logit via a one-hot sum (no dynamic gather)
        cls = jax.lax.broadcasted_iota(jnp.int32, shifted.shape, 1)   # (tile_n, C)
        picked = jnp.sum(jnp.where(cls == t, shifted, 0.0),
                         axis=-1, keepdims=True)                      # (tile_n, 1)

        # focal term only for the target class — everything below is (tile_n, 1)
        # TODO(synk): for small C this lane-sparse tail (and the cross-lane
        #             reductions above) could be made lane-dense / moved onto
        #             the idle MXU as a further v6e/v7x compute trim.
        log_p = picked - lse
        p = jnp.exp(log_p)
        omp = 1.0 - p
        if gamma == 2.0:
            mod = omp * omp            # VALU multiply; avoids EUP pow(log+exp)
        elif gamma == 1.0:
            mod = omp
        elif gamma == 0.0:
            mod = jnp.ones_like(omp)
        else:
            # clamp: fp rounding can give p > 1 -> omp < 0 -> NaN under float pow
            mod = jnp.maximum(omp, 0.0) ** gamma
        focal = mod * log_p                                           # (tile_n, 1)

        if not ragged:
            # evenly tiled: ragged mask never emitted
            o_ref[0] = -jnp.sum(focal, axis=0, keepdims=True)
        else:
            i = pl.program_id(0)
            last = n_tiles - 1

            @pl.when(i != last)
            def _full_tile():
                o_ref[0] = -jnp.sum(focal, axis=0, keepdims=True)

            @pl.when(i == last)
            def _ragged_tile():
                # mask rows past n_rows; jnp.where is a select so padded-row
                # garbage/NaN cannot leak into the sum.
                row = jax.lax.broadcasted_iota(jnp.int32, focal.shape, 0)
                valid = (i * tile_n + row) < n_rows
                o_ref[0] = -jnp.sum(jnp.where(valid, focal, 0.0),
                                    axis=0, keepdims=True)

    return kernel


def focal_loss(logits, targets, gamma=GAMMA, tile_n=None):
    """logits: (N, C) float (f32 or bf16); targets: (N,) int.

    Returns the scalar f32 focal loss with reduction='sum', weight=None
    (matching the torch module defaults)."""
    n_rows, n_cls = logits.shape
    itemsize = jnp.dtype(logits.dtype).itemsize
    align = 16 if itemsize < 4 else 8

    if tile_n is None:
        tile_n = _pick_tile_n(n_rows, n_cls, itemsize)
    if tile_n >= n_rows:
        tile_n = n_rows            # single block == full dims, always legal
    else:
        assert tile_n % align == 0, (
            f"row tile must be a multiple of {align} for {logits.dtype} logits")
    n_tiles = int(pl.cdiv(n_rows, tile_n))

    t2d = targets.astype(jnp.int32).reshape(n_rows, 1)

    # explicit scoped-VMEM budget: double-buffered inputs (incl. lane-padded
    # targets) + f32 temporaries; capped at 64 MiB to stay v7x-safe.
    est_vmem = tile_n * _per_row_vmem_bytes(n_cls, itemsize)
    vmem_limit = int(min(64 * 1024 * 1024,
                         max(32 * 1024 * 1024, est_vmem + (8 << 20))))

    cost = pl.CostEstimate(
        flops=8 * n_rows * n_cls,
        transcendentals=n_rows * (n_cls + 2),
        bytes_accessed=n_rows * n_cls * itemsize + n_rows * 4 + n_tiles * 4,
    )

    partials = pl.pallas_call(
        _make_focal_kernel(n_rows, tile_n, n_tiles, gamma),
        out_shape=jax.ShapeDtypeStruct((n_tiles, 1, 1), jnp.float32),
        grid_spec=pltpu.PrefetchScalarGridSpec(
            num_scalar_prefetch=0,
            grid=(n_tiles,),
            in_specs=[
                pl.BlockSpec((tile_n, n_cls), lambda i: (i, 0)),
                pl.BlockSpec((tile_n, 1), lambda i: (i, 0)),
            ],
            # one independent (1, 1, 1) partial per grid step
            out_specs=pl.BlockSpec((1, 1, 1), lambda i: (i, 0, 0)),
        ),
        compiler_params=pltpu.CompilerParams(
            # tiles are independent -> shardable across TensorCores (v7x)
            dimension_semantics=("parallel",),
            vmem_limit_bytes=vmem_limit,
        ),
        cost_estimate=cost,
    )(logits, t2d)

    # tiny epilogue: sum the per-tile partials
    return jnp.sum(partials)


def focal_loss_ref(logits, targets, gamma=GAMMA):
    # pure-JAX reference for a quick sanity check
    log_prob = jax.nn.log_softmax(logits.astype(jnp.float32), axis=-1)
    prob = jnp.exp(log_prob)
    focal = ((1.0 - prob) ** gamma) * log_prob
    picked = jnp.take_along_axis(
        focal, targets[:, None].astype(jnp.int32), axis=-1)[:, 0]
    return -jnp.sum(picked)


if __name__ == "__main__":
    key = jax.random.PRNGKey(0)
    k1, k2, k3, k4, k5, k6 = jax.random.split(key, 6)

    # case 1: evenly tiled f32 — 64 rows, 32 classes, 16-row tiles (4 tiles)
    n1, c1 = 64, 32
    logits1 = jax.random.normal(k1, (n1, c1), dtype=jnp.float32)
    targets1 = jax.random.randint(k2, (n1,), 0, c1, dtype=jnp.int32)
    loss1 = focal_loss(logits1, targets1, tile_n=16)
    jax.block_until_ready(loss1)
    ref1 = focal_loss_ref(logits1, targets1)
    assert jnp.allclose(loss1, ref1, rtol=1e-5, atol=1e-4), (loss1, ref1)

    # case 2: ragged last tile — 20 rows, 8 classes, 8-row tiles (mask on last)
    n2, c2 = 20, 8
    logits2 = jax.random.normal(k3, (n2, c2), dtype=jnp.float32)
    targets2 = jax.random.randint(k4, (n2,), 0, c2, dtype=jnp.int32)
    loss2 = focal_loss(logits2, targets2, tile_n=8)
    jax.block_until_ready(loss2)
    ref2 = focal_loss_ref(logits2, targets2)
    assert jnp.allclose(loss2, ref2, rtol=1e-5, atol=1e-4), (loss2, ref2)

    # case 3: bf16 logits fast path — 48 rows, 128 classes, 16-row tiles
    n3, c3 = 48, 128
    logits3 = jax.random.normal(k5, (n3, c3), dtype=jnp.float32).astype(jnp.bfloat16)
    targets3 = jax.random.randint(k6, (n3,), 0, c3, dtype=jnp.int32)
    loss3 = focal_loss(logits3, targets3, tile_n=16)
    jax.block_until_ready(loss3)
    ref3 = focal_loss_ref(logits3, targets3)
    assert jnp.allclose(loss3, ref3, rtol=1e-4, atol=1e-3), (loss3, ref3)

    print("KERNEL_OK")
</pallas_src>

<mosaic_0001>
module attributes {stable_mosaic.version = 11 : i64} {
  func.func @kernel(%arg0: i32, %arg1: memref<16x32xf32, #tpu.memory_space<vmem>>, %arg2: memref<16x1xi32, #tpu.memory_space<vmem>>, %arg3: memref<1x1x1xf32, #tpu.memory_space<vmem>>) attributes {dimension_semantics = [#tpu.dimension_semantics<parallel>], iteration_bounds = array<i64: 4>, scalar_prefetch = 0 : i64, scratch_operands = 0 : i64, tpu.core_type = #tpu.core_type<tc>, window_params = [{transform_indices = @transform_0, window_bounds = array<i64: 16, 32>}, {transform_indices = @transform_1, window_bounds = array<i64: 16, 1>}, {transform_indices = @transform_2, window_bounds = array<i64: 1, 1, 1>}]} {
    %c0 = arith.constant 0 : index
    %c0_0 = arith.constant 0 : index
    %0 = vector.load %arg1[%c0, %c0_0] : memref<16x32xf32, #tpu.memory_space<vmem>>, vector<16x32xf32>
    %c0_1 = arith.constant 0 : index
    %c0_2 = arith.constant 0 : index
    %1 = vector.load %arg2[%c0_1, %c0_2] : memref<16x1xi32, #tpu.memory_space<vmem>>, vector<16x1xi32>
    %cst = arith.constant dense<0xFF800000> : vector<16xf32>
    %2 = vector.multi_reduction <maximumf>, %0, %cst [1] : vector<16x32xf32> to vector<16xf32>
    %3 = vector.shape_cast %2 : vector<16xf32> to vector<16x1xf32>
    %4 = vector.broadcast %3 : vector<16x1xf32> to vector<16x32xf32>
    %5 = arith.subf %0, %4 : vector<16x32xf32>
    %6 = math.exp %5 : vector<16x32xf32>
    %cst_3 = arith.constant dense<0.000000e+00> : vector<16xf32>
    %7 = vector.multi_reduction <add>, %6, %cst_3 [1] : vector<16x32xf32> to vector<16xf32>
    %8 = vector.shape_cast %7 : vector<16xf32> to vector<16x1xf32>
    %9 = math.log %8 : vector<16x1xf32>
    %10 = tpu.iota {dimensions = array<i32: 1>} : vector<16x32xi32>
    %11 = vector.broadcast %1 : vector<16x1xi32> to vector<16x32xi32>
    %12 = arith.cmpi eq, %10, %11 : vector<16x32xi32>
    %cst_4 = arith.constant 0.000000e+00 : f32
    %13 = vector.broadcast %cst_4 : f32 to vector<16x32xf32>
    %14 = arith.select %12, %5, %13 : vector<16x32xi1>, vector<16x32xf32>
    %cst_5 = arith.constant dense<0.000000e+00> : vector<16xf32>
    %15 = vector.multi_reduction <add>, %14, %cst_5 [1] : vector<16x32xf32> to vector<16xf32>
    %16 = vector.shape_cast %15 : vector<16xf32> to vector<16x1xf32>
    %17 = arith.subf %16, %9 : vector<16x1xf32>
    %18 = math.exp %17 : vector<16x1xf32>
    %cst_6 = arith.constant 1.000000e+00 : f32
    %19 = vector.broadcast %cst_6 : f32 to vector<16x1xf32>
    %20 = arith.subf %19, %18 : vector<16x1xf32>
    %21 = arith.mulf %20, %20 : vector<16x1xf32>
    %22 = arith.mulf %21, %17 : vector<16x1xf32>
    %cst_7 = arith.constant dense<0.000000e+00> : vector<1xf32>
    %23 = vector.multi_reduction <add>, %22, %cst_7 [0] : vector<16x1xf32> to vector<1xf32>
    %24 = vector.shape_cast %23 : vector<1xf32> to vector<1x1xf32>
    %cst_8 = arith.constant 0.000000e+00 : f32
    %25 = vector.broadcast %cst_8 : f32 to vector<1x1xf32>
    %26 = arith.subf %25, %24 : vector<1x1xf32>
    %c0_9 = arith.constant 0 : index
    %c0_10 = arith.constant 0 : index
    %c0_11 = arith.constant 0 : index
    %27 = vector.load %arg3[%c0_9, %c0_10, %c0_11] : memref<1x1x1xf32, #tpu.memory_space<vmem>>, vector<1x1x1xf32>
    %28 = vector.shape_cast %27 : vector<1x1x1xf32> to vector<1x1xf32>
    %29 = vector.shape_cast %26 : vector<1x1xf32> to vector<1x1x1xf32>
    tpu.vector_store %arg3[%c0_9, %c0_10, %c0_11], %29 {strides = array<i32>} : memref<1x1x1xf32, #tpu.memory_space<vmem>>, vector<1x1x1xf32>,
    return
  }
  func.func @transform_0(%arg0: i32) -> (i32, i32) {
    %c0_i32 = arith.constant 0 : i32
    %c0_i32_0 = arith.constant 0 : i32
    return %arg0, %c0_i32 : i32, i32
  }
  func.func @transform_1(%arg0: i32) -> (i32, i32) {
    %c0_i32 = arith.constant 0 : i32
    %c0_i32_0 = arith.constant 0 : i32
    return %arg0, %c0_i32 : i32, i32
  }
  func.func @transform_2(%arg0: i32) -> (i32, i32, i32) {
    %c0_i32 = arith.constant 0 : i32
    %c0_i32_0 = arith.constant 0 : i32
    %c0_i32_1 = arith.constant 0 : i32
    return %arg0, %c0_i32, %c0_i32_0 : i32, i32, i32
  }
}

</mosaic_0001>

<bundles_post_ra>
// kernel: tpu_custom_call.1
= control target key start
LH: loop header
LB: loop body
LE: loop exit
PB: predicated region body
PF: predicated region fallthrough
CT: control target
= control target key end

     0   :  { %s348_s9 = smov 0   ;;  %s379_s0 = inlined_call_operand.vmem [shape: f32[64,32], index: 0, kind: input, shape index: {}]   ;;  %s380_s1 = inlined_call_operand.vmem [shape: s32[64,1], index: 1, kind: input, shape index: {}]   ;;  %s381_s2 = inlined_call_operand.vmem [shape: f32[4,1,1], index: 2, kind: output, shape index: {}]  }
   0x1 LB: > { %s354_s10 = sadd.s32 4294967295, %s330_s9   ;;  %p294_p0 = scmp.ge.s32.totalorder %s330_s9, 1  ;;  %s330_s9 = sphi %s348_s9, %s12_s9  }
   0x2   : > { %p124_p1 = scmp.lt.s32.totalorder %s330_s9, 5 }
   0x4   : > { %p125_p2 = pnand %p294_p0, %p124_p1 }
   0x5   : > { %s295_s11 = sshll.u32 (!%p125_p2), %s354_s10, 1  ;;  %p161_p4 = scmp.lt.s32.totalorder (!%p125_p2), %s354_s10, 3 }
   0x6   : > { %128 = sbr.rel (%p125_p2) target bundleno = 372 (0x174), region = 28  ;;  %p150_p3 = scmp.lt.s32.totalorder (!%p125_p2), %s295_s11, 7 }
   0xb   : > { %v332_v0 = vmov 0   ;;  %s383_s11 = smov (!%p150_p3, %s295_s11), 7  ;;  %vm168_vm0 = vcmask 261120   ;;  %v191_v13 = vlaneseq  ;;  %s385_s10 = smov (!%p161_p4, %s354_s10), 3  ;;  %vm229_vm3 = vcmask 0  }
   0xc   : > { %310 = vset.pattern.permute.xlu1 %v332_v0  ;;  %311 = vset.pattern.permute.xlu0 %v332_v0  ;;  %s296_s12 = sshll.u32 %s383_s11, 3  ;;  %s163_s21 = scalar_lea.vmem %s381_s2, %s385_s10 }
   0xd   : > { %s153_s15 = scalar_lea.vmem %s379_s0, %s296_s12  ;;  %s159_s18 = scalar_lea.vmem %s380_s1, %s296_s12  ;;  %v192_v15 = vand.u32 127, %v191_v13 }
   0xe   : > { %v164_v1 = vld [vmem:[%s153_s15] sm:$0xff]  ;;  %v165_v2 = vld [vmem:[%s153_s15 + $0x8] sm:$0xff] }
   0xf   : > { %v166_v3 = vld [vmem:[%s159_s18] sm:$0xff]  ;;  %v169_v4 = vsel %vm168_vm0, %v164_v1, -inf  ;;  %v167_v5 = vld [vmem:[%s159_s18 + $0x8] sm:$0xff]  ;;  %v172_v6 = vsel %vm168_vm0, %v165_v2, -inf }
  0x10   : > { %194 = vperm.xlu1 %310, %v166_v3   ;;  %170 = vmax.xlane.f32.xlu0 %v169_v4 }
  0x14   : > { %197 = vperm.xlu1 %310, %v167_v5   ;;  %173 = vmax.xlane.f32.xlu0 %v172_v6 }
  0x8b   : > { %v195_v14 = vpop.permute.xlu1 %194 }
  0x8c   : > { %vm199_vm1 = vcmp.eq.s32.totalorder %v192_v15, %v195_v14 }
  0x8f   : > { %v198_v17 = vpop.permute.xlu1 %197 }
  0x90   : > { %vm200_vm2 = vcmp.eq.s32.totalorder %v192_v15, %v198_v17 }
  0x99   : > { %v171_v7 = vpop.xlane.xlu0 %170 }
  0x9a   : > { %v175_v8 = vsub.f32 %v164_v1, %v171_v7 }
  0x9c   : > { %v177_v9 = vmul.f32 1.442695, %v175_v8  ;;  %v201_v19 = vsel %vm199_vm1, %v175_v8, 0.0 }
  0x9d   : > { %v174_v10 = vpop.xlane.xlu0 %173  ;;  %v203_v21 = vsel %vm168_vm0, %v201_v19, 0.0 }
  0x9e   : > { %312 = vpow2.f32 %v177_v9  ;;  %v176_v11 = vsub.f32 %v165_v2, %v174_v10 }
  0xa0   : > { %v179_v12 = vmul.f32 1.442695, %v176_v11  ;;  %v202_v23 = vsel %vm200_vm2, %v176_v11, 0.0 }
  0xa1   : > { %v206_v24 = vsel %vm168_vm0, %v202_v23, 0.0 }
  0xa2   : > { %314 = vpow2.f32 %v179_v12 }
  0xab   : > { %v313_v16 = vpop.eup %312 }
  0xac   : > { %v181_v18 = vsel %vm168_vm0, %v313_v16, 0.0 }
  0xad   : > { %182 = vadd.xlane.f32.xlu0 %v181_v18 }
  0xaf   : > { %v315_v20 = vpop.eup %314 }
  0xb0   : > { %v184_v22 = vsel %vm168_vm0, %v315_v20, 0.0 }
  0xb1   : > { %204 = vadd.xlane.f32.xlu0 %v203_v21  ;;  %185 = vadd.xlane.f32.xlu1 %v184_v22 }
  0xb5   : > { %207 = vadd.xlane.f32.xlu0 %v206_v24 }
 0x136   : > { %v183_v25 = vpop.xlane.xlu0 %182 }
 0x137   : > { %316 = vlog2.f32 %v183_v25 }
 0x13a   : > { %v186_v26 = vpop.xlane.xlu1 %185  ;;  %v205_v28 = vpop.xlane.xlu0 %204 }
 0x13b   : > { %318 = vlog2.f32 %v186_v26 }
 0x13e   : > { %v208_v34 = vpop.xlane.xlu0 %207 }
 0x144   : > { %v317_v27 = vpop.eup %316 }
 0x145   : > { %v188_v29 = vmul.f32 0.6931472, %v317_v27 }
 0x147   : > { %v209_v30 = vsub.f32 %v205_v28, %v188_v29 }
 0x148   : > { %v319_v31 = vpop.eup %318 }
 0x149   : > { %v211_v32 = vmul.f32 1.442695, %v209_v30  ;;  %v190_v33 = vmul.f32 0.6931472, %v319_v31 }
 0x14b   : > { %320 = vpow2.f32 %v211_v32  ;;  %v210_v35 = vsub.f32 %v208_v34, %v190_v33 }
 0x14d   : > { %v213_v36 = vmul.f32 1.442695, %v210_v35 }
 0x14f   : > { %322 = vpow2.f32 %v213_v36 }
 0x158   : > { %v321_v37 = vpop.eup %320 }
 0x159   : > { %v215_v38 = vsub.f32 1.0, %v321_v37 }
 0x15b   : > { %v217_v40 = vmul.f32 %v215_v38, %v215_v38 }
 0x15c   : > { %v323_v39 = vpop.eup %322 }
 0x15d   : > { %v216_v41 = vsub.f32 1.0, %v323_v39  ;;  %v219_v43 = vmul.f32 %v217_v40, %v209_v30 }
 0x15f   : > { %v218_v42 = vmul.f32 %v216_v41, %v216_v41 }
 0x161   : > { %v220_v44 = vmul.f32 %v218_v42, %v210_v35 }
 0x163   : > { %v221_v45 = vadd.f32 %v220_v44, %v219_v43 }
 0x165   : > { %v222_v46 = vrot.slane %v221_v45, 4 }
 0x167   : > { %v223_v47 = vadd.f32 %v222_v46, %v221_v45 }
 0x169   : > { %v224_v48 = vrot.slane %v223_v47, 2 }
 0x16b   : > { %v225_v49 = vadd.f32 %v224_v48, %v223_v47 }
 0x16d   : > { %v226_v50 = vrot.slane %v225_v49, 1 }
 0x16f   : > { %v227_v51 = vadd.f32 %v226_v50, %v225_v49 }
 0x171   : > { %v228_v52 = vsub.f32 0.0, %v227_v51 }
 0x173   : > { %230 = vst.msk [vmem:[%s163_s21] sm:$0x1] %vm229_vm3, %v228_v52 }
 0x174 PF: > { %s12_s9 = sadd.s32 1, %s330_s9  }
 0x175   : > { %p9_p5 = scmp.ge.s32.totalorder %s12_s9, 6  }
 0x177   :  { %11 = sbr.rel (!%p9_p5) target bundleno = 1 (0x1), region = 61 }

</bundles_post_ra>
